<compile_context>
chip_gen: v7x
topology: tpu7x:2x2x1
jax: 0.10.0
libtpu: 0.0.40
codegen_flags: <defaults>
</compile_context>

<pallas_src>
import math

import jax
import jax.numpy as jnp
from jax import lax
from jax.experimental import pallas as pl
from jax.experimental.pallas import tpu as pltpu

# --- Model config (small, consistent with the module) -----------------------
HIDDEN = 32          # config.hidden_size
NUM_HEADS = 4        # config.num_attention_heads
HEAD_DIM = HIDDEN // NUM_HEADS
N_LABELS = 4         # n_labels
SEQ = 8              # sequence length of hidden_states
TOTAL = N_LABELS + SEQ
BATCH = 2


def _make_attention_kernel(batch, n_labels, seq):
    inv_scale = 1.0 / math.sqrt(float(HIDDEN))   # module divides by sqrt(all_head_size)

    def kernel(lab_ref, hid_ref, wqkv_ref, bqkv_ref, out_ref):
        # lab_ref : (B, L, H)   labels_embedding
        # hid_ref : (B, S, H)   hidden_states
        # wqkv_ref: (H, 3H)     pre-transposed + fused [Wq.T | Wk.T | Wv.T]
        # bqkv_ref: (1, 3H)     fused [bq | bk | bv]
        # out_ref : (B*L, H)    merged context layer (reshaped to (B, L, H) in wrapper)
        lab2 = lab_ref[...].reshape(batch * n_labels, HIDDEN)    # (B*L, H)
        hid2 = hid_ref[...].reshape(batch * seq, HIDDEN)         # (B*S, H)
        h2 = jnp.concatenate([lab2, hid2], axis=0)               # (B*(L+S), H)

        # Fused QKV projection: one MXU push instead of three, no in-kernel weight transpose.
        qkv = jnp.dot(h2, wqkv_ref[...],
                      preferred_element_type=jnp.float32) + bqkv_ref[...]   # (B*T, 3H)

        scores = []
        v_heads = []
        for b in range(batch):
            # Rebuild the [labels ; hidden] row order for batch b.
            lab_rows = qkv[b * n_labels:(b + 1) * n_labels, :]
            hid_rows = qkv[batch * n_labels + b * seq:
                           batch * n_labels + (b + 1) * seq, :]
            qkv_b = jnp.concatenate([lab_rows, hid_rows], axis=0)            # (T, 3H)
            q_b = qkv_b[:n_labels, 0:HIDDEN]                                 # (L, H) queries from labels only
            k_b = qkv_b[:, HIDDEN:2 * HIDDEN]                                # (T, H)
            v_b = qkv_b[:, 2 * HIDDEN:3 * HIDDEN]                            # (T, H)
            for hd in range(NUM_HEADS):
                lo = hd * HEAD_DIM
                qh = q_b[:, lo:lo + HEAD_DIM]                                # (L, D)
                kh = k_b[:, lo:lo + HEAD_DIM]                                # (T, D)
                vh = v_b[:, lo:lo + HEAD_DIM]                                # (T, D)
                # Contract on the last dims directly -> no K transpose / XLU relayout.
                s = lax.dot_general(qh, kh, (((1,), (1,)), ((), ())),
                                    preferred_element_type=jnp.float32) * inv_scale  # (L, T)
                scores.append(s)
                v_heads.append(vh)

        # Single softmax pass: all (batch, head) score tiles stacked on the sublane axis,
        # so the cross-lane max/sum reductions run once instead of B*NUM_HEADS times.
        s_all = jnp.concatenate(scores, axis=0)                  # (B*NH*L, T)
        m = jnp.max(s_all, axis=-1, keepdims=True)
        e = jnp.exp(s_all - m)
        denom = jnp.sum(e, axis=-1, keepdims=True)
        p_all = e * pl.reciprocal(denom, approx=True)            # reciprocal on the (idle) EUP slot

        out_rows = []
        for b in range(batch):
            heads = []
            for hd in range(NUM_HEADS):
                idx = b * NUM_HEADS + hd
                p = p_all[idx * n_labels:(idx + 1) * n_labels, :]            # (L, T)
                heads.append(jnp.dot(p, v_heads[idx],
                                     preferred_element_type=jnp.float32))    # (L, D)
            # permute(0,2,1,3) + view(..., all_head_size) == concat heads on last dim
            out_rows.append(jnp.concatenate(heads, axis=-1))                  # (L, H)

        # One contiguous store of the whole output slab.
        out_ref[...] = jnp.concatenate(out_rows, axis=0).astype(out_ref.dtype)  # (B*L, H)

    return kernel


def attention_forward(hidden_states, labels_embedding, wq, bq, wk, bk, wv, bv):
    # attention_mask=None path; dropout is identity (eval mode).
    # TODO(synk): attention_mask path (concat with the hard-coded zeros(B,1,1,148)) not implemented.
    B, S, H = hidden_states.shape
    L = labels_embedding.shape[1]
    assert H == HIDDEN and L == N_LABELS and S == SEQ

    # Host-side fusion: y = x @ [Wq.T | Wk.T | Wv.T] + [bq | bk | bv].
    w_qkv = jnp.concatenate([wq.T, wk.T, wv.T], axis=1)            # (H, 3H)
    b_qkv = jnp.concatenate([bq, bk, bv]).reshape(1, 3 * HIDDEN)   # (1, 3H)

    kernel = _make_attention_kernel(B, L, S)

    out_flat = pl.pallas_call(
        kernel,
        out_shape=jax.ShapeDtypeStruct((B * L, HIDDEN), jnp.float32),
        # Whole problem is a few KB: one invocation, no per-batch serial grid steps.
        grid=(1,),
        in_specs=[
            pl.BlockSpec((B, L, HIDDEN), lambda i: (0, 0, 0)),
            pl.BlockSpec((B, S, HIDDEN), lambda i: (0, 0, 0)),
            pl.BlockSpec((HIDDEN, 3 * HIDDEN), lambda i: (0, 0)),
            pl.BlockSpec((1, 3 * HIDDEN), lambda i: (0, 0)),
        ],
        out_specs=pl.BlockSpec((B * L, HIDDEN), lambda i: (0, 0)),
        compiler_params=pltpu.CompilerParams(dimension_semantics=("arbitrary",)),
    )(labels_embedding, hidden_states, w_qkv, b_qkv)

    return out_flat.reshape(B, L, HIDDEN)


def attention_reference(hidden_states, labels_embedding, wq, bq, wk, bk, wv, bv):
    h = jnp.concatenate([labels_embedding, hidden_states], axis=1)        # (B, T, H)
    q = h[:, :N_LABELS, :] @ wq.T + bq                                    # (B, L, H)
    k = h @ wk.T + bk                                                     # (B, T, H)
    v = h @ wv.T + bv
    B = h.shape[0]
    qh = q.reshape(B, N_LABELS, NUM_HEADS, HEAD_DIM).transpose(0, 2, 1, 3)
    kh = k.reshape(B, TOTAL, NUM_HEADS, HEAD_DIM).transpose(0, 2, 1, 3)
    vh = v.reshape(B, TOTAL, NUM_HEADS, HEAD_DIM).transpose(0, 2, 1, 3)
    scores = jnp.einsum('bhld,bhtd->bhlt', qh, kh) / math.sqrt(HIDDEN)
    probs = jax.nn.softmax(scores, axis=-1)
    ctx = jnp.einsum('bhlt,bhtd->bhld', probs, vh)
    return ctx.transpose(0, 2, 1, 3).reshape(B, N_LABELS, HIDDEN)


if __name__ == "__main__":
    key = jax.random.PRNGKey(0)
    ks = jax.random.split(key, 8)
    hidden_states = jax.random.normal(ks[0], (BATCH, SEQ, HIDDEN), jnp.float32)
    labels_embedding = jax.random.normal(ks[1], (BATCH, N_LABELS, HIDDEN), jnp.float32)
    wq = 0.02 * jax.random.normal(ks[2], (HIDDEN, HIDDEN), jnp.float32)
    bq = 0.02 * jax.random.normal(ks[3], (HIDDEN,), jnp.float32)
    wk = 0.02 * jax.random.normal(ks[4], (HIDDEN, HIDDEN), jnp.float32)
    bk = 0.02 * jax.random.normal(ks[5], (HIDDEN,), jnp.float32)
    wv = 0.02 * jax.random.normal(ks[6], (HIDDEN, HIDDEN), jnp.float32)
    bv = 0.02 * jax.random.normal(ks[7], (HIDDEN,), jnp.float32)

    out = attention_forward(hidden_states, labels_embedding, wq, bq, wk, bk, wv, bv)
    out = jax.block_until_ready(out)

    ref = attention_reference(hidden_states, labels_embedding, wq, bq, wk, bk, wv, bv)
    assert out.shape == (BATCH, N_LABELS, HIDDEN)
    # Tolerance relaxed slightly vs the exact-divide version because the softmax
    # denominator uses the EUP approximate reciprocal (pl.reciprocal(approx=True)).
    assert jnp.allclose(out, ref, atol=2e-3, rtol=2e-3), "mismatch vs reference"
    print("KERNEL_OK")
</pallas_src>

<mosaic_0001>
module attributes {stable_mosaic.version = 11 : i64} {
  func.func @kernel(%arg0: i32, %arg1: memref<2x4x32xf32, #tpu.memory_space<vmem>>, %arg2: memref<2x8x32xf32, #tpu.memory_space<vmem>>, %arg3: memref<32x96xf32, #tpu.memory_space<vmem>>, %arg4: memref<1x96xf32, #tpu.memory_space<vmem>>, %arg5: memref<8x32xf32, #tpu.memory_space<vmem>>) attributes {dimension_semantics = [#tpu.dimension_semantics<arbitrary>], iteration_bounds = array<i64: 1>, scalar_prefetch = 0 : i64, scratch_operands = 0 : i64, tpu.core_type = #tpu.core_type<tc>, window_params = [{pipeline_mode = #tpu.pipeline_mode<synchronous>, transform_indices = @transform_0, window_bounds = array<i64: 2, 4, 32>}, {pipeline_mode = #tpu.pipeline_mode<synchronous>, transform_indices = @transform_1, window_bounds = array<i64: 2, 8, 32>}, {pipeline_mode = #tpu.pipeline_mode<synchronous>, transform_indices = @transform_2, window_bounds = array<i64: 32, 96>}, {pipeline_mode = #tpu.pipeline_mode<synchronous>, transform_indices = @transform_3, window_bounds = array<i64: 1, 96>}, {pipeline_mode = #tpu.pipeline_mode<synchronous>, transform_indices = @transform_4, window_bounds = array<i64: 8, 32>}]} {
    %c0 = arith.constant 0 : index
    %c0_0 = arith.constant 0 : index
    %c0_1 = arith.constant 0 : index
    %0 = vector.load %arg1[%c0, %c0_0, %c0_1] : memref<2x4x32xf32, #tpu.memory_space<vmem>>, vector<2x4x32xf32>
    %1 = vector.shape_cast %0 : vector<2x4x32xf32> to vector<8x32xf32>
    %c0_2 = arith.constant 0 : index
    %c0_3 = arith.constant 0 : index
    %c0_4 = arith.constant 0 : index
    %2 = vector.load %arg2[%c0_2, %c0_3, %c0_4] : memref<2x8x32xf32, #tpu.memory_space<vmem>>, vector<2x8x32xf32>
    %3 = vector.shape_cast %2 : vector<2x8x32xf32> to vector<16x32xf32>
    %4 = tpu.concatenate %1, %3 in 0 : vector<8x32xf32>, vector<16x32xf32> -> vector<24x32xf32>
    %c0_5 = arith.constant 0 : index
    %c0_6 = arith.constant 0 : index
    %5 = vector.load %arg3[%c0_5, %c0_6] : memref<32x96xf32, #tpu.memory_space<vmem>>, vector<32x96xf32>
    %cst = arith.constant dense<0.000000e+00> : vector<24x96xf32>
    %6 = tpu.matmul %4, %5, %cst {dimension_numbers = #tpu.dot_dimension_numbers<[1], [0], [0], [1], [0, 0, 1, 1], [], []>} : vector<24x32xf32>, vector<32x96xf32>, vector<24x96xf32> -> vector<24x96xf32>
    %c0_7 = arith.constant 0 : index
    %c0_8 = arith.constant 0 : index
    %7 = vector.load %arg4[%c0_7, %c0_8] : memref<1x96xf32, #tpu.memory_space<vmem>>, vector<1x96xf32>
    %8 = vector.broadcast %7 : vector<1x96xf32> to vector<24x96xf32>
    %9 = arith.addf %6, %8 : vector<24x96xf32>
    %10 = vector.extract_strided_slice %9 {offsets = [0, 0], sizes = [4, 96], strides = [1, 1]} : vector<24x96xf32> to vector<4x96xf32>
    %11 = vector.extract_strided_slice %9 {offsets = [8, 0], sizes = [8, 96], strides = [1, 1]} : vector<24x96xf32> to vector<8x96xf32>
    %12 = tpu.concatenate %10, %11 in 0 : vector<4x96xf32>, vector<8x96xf32> -> vector<12x96xf32>
    %13 = vector.extract_strided_slice %12 {offsets = [0, 0], sizes = [4, 32], strides = [1, 1]} : vector<12x96xf32> to vector<4x32xf32>
    %14 = vector.extract_strided_slice %12 {offsets = [0, 32], sizes = [12, 32], strides = [1, 1]} : vector<12x96xf32> to vector<12x32xf32>
    %15 = vector.extract_strided_slice %12 {offsets = [0, 64], sizes = [12, 32], strides = [1, 1]} : vector<12x96xf32> to vector<12x32xf32>
    %16 = vector.extract_strided_slice %13 {offsets = [0, 0], sizes = [4, 8], strides = [1, 1]} : vector<4x32xf32> to vector<4x8xf32>
    %17 = vector.extract_strided_slice %14 {offsets = [0, 0], sizes = [12, 8], strides = [1, 1]} : vector<12x32xf32> to vector<12x8xf32>
    %18 = vector.extract_strided_slice %15 {offsets = [0, 0], sizes = [12, 8], strides = [1, 1]} : vector<12x32xf32> to vector<12x8xf32>
    %cst_9 = arith.constant dense<0.000000e+00> : vector<4x12xf32>
    %19 = tpu.matmul %16, %17, %cst_9 {dimension_numbers = #tpu.dot_dimension_numbers<[1], [1], [0], [0], [0, 0, 1, 0], [], []>} : vector<4x8xf32>, vector<12x8xf32>, vector<4x12xf32> -> vector<4x12xf32>
    %cst_10 = arith.constant 0.176776692 : f32
    %20 = vector.broadcast %cst_10 : f32 to vector<4x12xf32>
    %21 = arith.mulf %19, %20 : vector<4x12xf32>
    %22 = vector.extract_strided_slice %13 {offsets = [0, 8], sizes = [4, 8], strides = [1, 1]} : vector<4x32xf32> to vector<4x8xf32>
    %23 = vector.extract_strided_slice %14 {offsets = [0, 8], sizes = [12, 8], strides = [1, 1]} : vector<12x32xf32> to vector<12x8xf32>
    %24 = vector.extract_strided_slice %15 {offsets = [0, 8], sizes = [12, 8], strides = [1, 1]} : vector<12x32xf32> to vector<12x8xf32>
    %cst_11 = arith.constant dense<0.000000e+00> : vector<4x12xf32>
    %25 = tpu.matmul %22, %23, %cst_11 {dimension_numbers = #tpu.dot_dimension_numbers<[1], [1], [0], [0], [0, 0, 1, 0], [], []>} : vector<4x8xf32>, vector<12x8xf32>, vector<4x12xf32> -> vector<4x12xf32>
    %cst_12 = arith.constant 0.176776692 : f32
    %26 = vector.broadcast %cst_12 : f32 to vector<4x12xf32>
    %27 = arith.mulf %25, %26 : vector<4x12xf32>
    %28 = vector.extract_strided_slice %13 {offsets = [0, 16], sizes = [4, 8], strides = [1, 1]} : vector<4x32xf32> to vector<4x8xf32>
    %29 = vector.extract_strided_slice %14 {offsets = [0, 16], sizes = [12, 8], strides = [1, 1]} : vector<12x32xf32> to vector<12x8xf32>
    %30 = vector.extract_strided_slice %15 {offsets = [0, 16], sizes = [12, 8], strides = [1, 1]} : vector<12x32xf32> to vector<12x8xf32>
    %cst_13 = arith.constant dense<0.000000e+00> : vector<4x12xf32>
    %31 = tpu.matmul %28, %29, %cst_13 {dimension_numbers = #tpu.dot_dimension_numbers<[1], [1], [0], [0], [0, 0, 1, 0], [], []>} : vector<4x8xf32>, vector<12x8xf32>, vector<4x12xf32> -> vector<4x12xf32>
    %cst_14 = arith.constant 0.176776692 : f32
    %32 = vector.broadcast %cst_14 : f32 to vector<4x12xf32>
    %33 = arith.mulf %31, %32 : vector<4x12xf32>
    %34 = vector.extract_strided_slice %13 {offsets = [0, 24], sizes = [4, 8], strides = [1, 1]} : vector<4x32xf32> to vector<4x8xf32>
    %35 = vector.extract_strided_slice %14 {offsets = [0, 24], sizes = [12, 8], strides = [1, 1]} : vector<12x32xf32> to vector<12x8xf32>
    %36 = vector.extract_strided_slice %15 {offsets = [0, 24], sizes = [12, 8], strides = [1, 1]} : vector<12x32xf32> to vector<12x8xf32>
    %cst_15 = arith.constant dense<0.000000e+00> : vector<4x12xf32>
    %37 = tpu.matmul %34, %35, %cst_15 {dimension_numbers = #tpu.dot_dimension_numbers<[1], [1], [0], [0], [0, 0, 1, 0], [], []>} : vector<4x8xf32>, vector<12x8xf32>, vector<4x12xf32> -> vector<4x12xf32>
    %cst_16 = arith.constant 0.176776692 : f32
    %38 = vector.broadcast %cst_16 : f32 to vector<4x12xf32>
    %39 = arith.mulf %37, %38 : vector<4x12xf32>
    %40 = vector.extract_strided_slice %9 {offsets = [4, 0], sizes = [4, 96], strides = [1, 1]} : vector<24x96xf32> to vector<4x96xf32>
    %41 = vector.extract_strided_slice %9 {offsets = [16, 0], sizes = [8, 96], strides = [1, 1]} : vector<24x96xf32> to vector<8x96xf32>
    %42 = tpu.concatenate %40, %41 in 0 : vector<4x96xf32>, vector<8x96xf32> -> vector<12x96xf32>
    %43 = vector.extract_strided_slice %42 {offsets = [0, 0], sizes = [4, 32], strides = [1, 1]} : vector<12x96xf32> to vector<4x32xf32>
    %44 = vector.extract_strided_slice %42 {offsets = [0, 32], sizes = [12, 32], strides = [1, 1]} : vector<12x96xf32> to vector<12x32xf32>
    %45 = vector.extract_strided_slice %42 {offsets = [0, 64], sizes = [12, 32], strides = [1, 1]} : vector<12x96xf32> to vector<12x32xf32>
    %46 = vector.extract_strided_slice %43 {offsets = [0, 0], sizes = [4, 8], strides = [1, 1]} : vector<4x32xf32> to vector<4x8xf32>
    %47 = vector.extract_strided_slice %44 {offsets = [0, 0], sizes = [12, 8], strides = [1, 1]} : vector<12x32xf32> to vector<12x8xf32>
    %48 = vector.extract_strided_slice %45 {offsets = [0, 0], sizes = [12, 8], strides = [1, 1]} : vector<12x32xf32> to vector<12x8xf32>
    %cst_17 = arith.constant dense<0.000000e+00> : vector<4x12xf32>
    %49 = tpu.matmul %46, %47, %cst_17 {dimension_numbers = #tpu.dot_dimension_numbers<[1], [1], [0], [0], [0, 0, 1, 0], [], []>} : vector<4x8xf32>, vector<12x8xf32>, vector<4x12xf32> -> vector<4x12xf32>
    %cst_18 = arith.constant 0.176776692 : f32
    %50 = vector.broadcast %cst_18 : f32 to vector<4x12xf32>
    %51 = arith.mulf %49, %50 : vector<4x12xf32>
    %52 = vector.extract_strided_slice %43 {offsets = [0, 8], sizes = [4, 8], strides = [1, 1]} : vector<4x32xf32> to vector<4x8xf32>
    %53 = vector.extract_strided_slice %44 {offsets = [0, 8], sizes = [12, 8], strides = [1, 1]} : vector<12x32xf32> to vector<12x8xf32>
    %54 = vector.extract_strided_slice %45 {offsets = [0, 8], sizes = [12, 8], strides = [1, 1]} : vector<12x32xf32> to vector<12x8xf32>
    %cst_19 = arith.constant dense<0.000000e+00> : vector<4x12xf32>
    %55 = tpu.matmul %52, %53, %cst_19 {dimension_numbers = #tpu.dot_dimension_numbers<[1], [1], [0], [0], [0, 0, 1, 0], [], []>} : vector<4x8xf32>, vector<12x8xf32>, vector<4x12xf32> -> vector<4x12xf32>
    %cst_20 = arith.constant 0.176776692 : f32
    %56 = vector.broadcast %cst_20 : f32 to vector<4x12xf32>
    %57 = arith.mulf %55, %56 : vector<4x12xf32>
    %58 = vector.extract_strided_slice %43 {offsets = [0, 16], sizes = [4, 8], strides = [1, 1]} : vector<4x32xf32> to vector<4x8xf32>
    %59 = vector.extract_strided_slice %44 {offsets = [0, 16], sizes = [12, 8], strides = [1, 1]} : vector<12x32xf32> to vector<12x8xf32>
    %60 = vector.extract_strided_slice %45 {offsets = [0, 16], sizes = [12, 8], strides = [1, 1]} : vector<12x32xf32> to vector<12x8xf32>
    %cst_21 = arith.constant dense<0.000000e+00> : vector<4x12xf32>
    %61 = tpu.matmul %58, %59, %cst_21 {dimension_numbers = #tpu.dot_dimension_numbers<[1], [1], [0], [0], [0, 0, 1, 0], [], []>} : vector<4x8xf32>, vector<12x8xf32>, vector<4x12xf32> -> vector<4x12xf32>
    %cst_22 = arith.constant 0.176776692 : f32
    %62 = vector.broadcast %cst_22 : f32 to vector<4x12xf32>
    %63 = arith.mulf %61, %62 : vector<4x12xf32>
    %64 = vector.extract_strided_slice %43 {offsets = [0, 24], sizes = [4, 8], strides = [1, 1]} : vector<4x32xf32> to vector<4x8xf32>
    %65 = vector.extract_strided_slice %44 {offsets = [0, 24], sizes = [12, 8], strides = [1, 1]} : vector<12x32xf32> to vector<12x8xf32>
    %66 = vector.extract_strided_slice %45 {offsets = [0, 24], sizes = [12, 8], strides = [1, 1]} : vector<12x32xf32> to vector<12x8xf32>
    %cst_23 = arith.constant dense<0.000000e+00> : vector<4x12xf32>
    %67 = tpu.matmul %64, %65, %cst_23 {dimension_numbers = #tpu.dot_dimension_numbers<[1], [1], [0], [0], [0, 0, 1, 0], [], []>} : vector<4x8xf32>, vector<12x8xf32>, vector<4x12xf32> -> vector<4x12xf32>
    %cst_24 = arith.constant 0.176776692 : f32
    %68 = vector.broadcast %cst_24 : f32 to vector<4x12xf32>
    %69 = arith.mulf %67, %68 : vector<4x12xf32>
    %70 = tpu.concatenate %21, %27, %33, %39, %51, %57, %63, %69 in 0 : vector<4x12xf32>, vector<4x12xf32>, vector<4x12xf32>, vector<4x12xf32>, vector<4x12xf32>, vector<4x12xf32>, vector<4x12xf32>, vector<4x12xf32> -> vector<32x12xf32>
    %cst_25 = arith.constant dense<0xFF800000> : vector<32xf32>
    %71 = vector.multi_reduction <maximumf>, %70, %cst_25 [1] : vector<32x12xf32> to vector<32xf32>
    %72 = vector.shape_cast %71 : vector<32xf32> to vector<32x1xf32>
    %73 = vector.broadcast %72 : vector<32x1xf32> to vector<32x12xf32>
    %74 = arith.subf %70, %73 : vector<32x12xf32>
    %75 = math.exp %74 : vector<32x12xf32>
    %cst_26 = arith.constant dense<0.000000e+00> : vector<32xf32>
    %76 = vector.multi_reduction <add>, %75, %cst_26 [1] : vector<32x12xf32> to vector<32xf32>
    %77 = vector.shape_cast %76 : vector<32xf32> to vector<32x1xf32>
    %78 = tpu.reciprocal %77 {approx = true} : vector<32x1xf32> -> vector<32x1xf32>
    %79 = vector.broadcast %78 : vector<32x1xf32> to vector<32x12xf32>
    %80 = arith.mulf %75, %79 : vector<32x12xf32>
    %81 = vector.extract_strided_slice %80 {offsets = [0, 0], sizes = [4, 12], strides = [1, 1]} : vector<32x12xf32> to vector<4x12xf32>
    %cst_27 = arith.constant dense<0.000000e+00> : vector<4x8xf32>
    %82 = tpu.matmul %81, %18, %cst_27 {dimension_numbers = #tpu.dot_dimension_numbers<[1], [0], [0], [1], [0, 0, 1, 1], [], []>} : vector<4x12xf32>, vector<12x8xf32>, vector<4x8xf32> -> vector<4x8xf32>
    %83 = vector.extract_strided_slice %80 {offsets = [4, 0], sizes = [4, 12], strides = [1, 1]} : vector<32x12xf32> to vector<4x12xf32>
    %cst_28 = arith.constant dense<0.000000e+00> : vector<4x8xf32>
    %84 = tpu.matmul %83, %24, %cst_28 {dimension_numbers = #tpu.dot_dimension_numbers<[1], [0], [0], [1], [0, 0, 1, 1], [], []>} : vector<4x12xf32>, vector<12x8xf32>, vector<4x8xf32> -> vector<4x8xf32>
    %85 = vector.extract_strided_slice %80 {offsets = [8, 0], sizes = [4, 12], strides = [1, 1]} : vector<32x12xf32> to vector<4x12xf32>
    %cst_29 = arith.constant dense<0.000000e+00> : vector<4x8xf32>
    %86 = tpu.matmul %85, %30, %cst_29 {dimension_numbers = #tpu.dot_dimension_numbers<[1], [0], [0], [1], [0, 0, 1, 1], [], []>} : vector<4x12xf32>, vector<12x8xf32>, vector<4x8xf32> -> vector<4x8xf32>
    %87 = vector.extract_strided_slice %80 {offsets = [12, 0], sizes = [4, 12], strides = [1, 1]} : vector<32x12xf32> to vector<4x12xf32>
    %cst_30 = arith.constant dense<0.000000e+00> : vector<4x8xf32>
    %88 = tpu.matmul %87, %36, %cst_30 {dimension_numbers = #tpu.dot_dimension_numbers<[1], [0], [0], [1], [0, 0, 1, 1], [], []>} : vector<4x12xf32>, vector<12x8xf32>, vector<4x8xf32> -> vector<4x8xf32>
    %89 = tpu.concatenate %82, %84, %86, %88 in 1 : vector<4x8xf32>, vector<4x8xf32>, vector<4x8xf32>, vector<4x8xf32> -> vector<4x32xf32>
    %90 = vector.extract_strided_slice %80 {offsets = [16, 0], sizes = [4, 12], strides = [1, 1]} : vector<32x12xf32> to vector<4x12xf32>
    %cst_31 = arith.constant dense<0.000000e+00> : vector<4x8xf32>
    %91 = tpu.matmul %90, %48, %cst_31 {dimension_numbers = #tpu.dot_dimension_numbers<[1], [0], [0], [1], [0, 0, 1, 1], [], []>} : vector<4x12xf32>, vector<12x8xf32>, vector<4x8xf32> -> vector<4x8xf32>
    %92 = vector.extract_strided_slice %80 {offsets = [20, 0], sizes = [4, 12], strides = [1, 1]} : vector<32x12xf32> to vector<4x12xf32>
    %cst_32 = arith.constant dense<0.000000e+00> : vector<4x8xf32>
    %93 = tpu.matmul %92, %54, %cst_32 {dimension_numbers = #tpu.dot_dimension_numbers<[1], [0], [0], [1], [0, 0, 1, 1], [], []>} : vector<4x12xf32>, vector<12x8xf32>, vector<4x8xf32> -> vector<4x8xf32>
    %94 = vector.extract_strided_slice %80 {offsets = [24, 0], sizes = [4, 12], strides = [1, 1]} : vector<32x12xf32> to vector<4x12xf32>
    %cst_33 = arith.constant dense<0.000000e+00> : vector<4x8xf32>
    %95 = tpu.matmul %94, %60, %cst_33 {dimension_numbers = #tpu.dot_dimension_numbers<[1], [0], [0], [1], [0, 0, 1, 1], [], []>} : vector<4x12xf32>, vector<12x8xf32>, vector<4x8xf32> -> vector<4x8xf32>
    %96 = vector.extract_strided_slice %80 {offsets = [28, 0], sizes = [4, 12], strides = [1, 1]} : vector<32x12xf32> to vector<4x12xf32>
    %cst_34 = arith.constant dense<0.000000e+00> : vector<4x8xf32>
    %97 = tpu.matmul %96, %66, %cst_34 {dimension_numbers = #tpu.dot_dimension_numbers<[1], [0], [0], [1], [0, 0, 1, 1], [], []>} : vector<4x12xf32>, vector<12x8xf32>, vector<4x8xf32> -> vector<4x8xf32>
    %98 = tpu.concatenate %91, %93, %95, %97 in 1 : vector<4x8xf32>, vector<4x8xf32>, vector<4x8xf32>, vector<4x8xf32> -> vector<4x32xf32>
    %99 = tpu.concatenate %89, %98 in 0 : vector<4x32xf32>, vector<4x32xf32> -> vector<8x32xf32>
    %c0_35 = arith.constant 0 : index
    %c0_36 = arith.constant 0 : index
    %100 = vector.load %arg5[%c0_35, %c0_36] : memref<8x32xf32, #tpu.memory_space<vmem>>, vector<8x32xf32>
    tpu.vector_store %arg5[%c0_35, %c0_36], %99 {strides = array<i32>} : memref<8x32xf32, #tpu.memory_space<vmem>>, vector<8x32xf32>,
    return
  }
  func.func @transform_0(%arg0: i32) -> (i32, i32, i32) {
    %c0_i32 = arith.constant 0 : i32
    %c0_i32_0 = arith.constant 0 : i32
    %c0_i32_1 = arith.constant 0 : i32
    %c0_i32_2 = arith.constant 0 : i32
    return %c0_i32, %c0_i32_0, %c0_i32_1 : i32, i32, i32
  }
  func.func @transform_1(%arg0: i32) -> (i32, i32, i32) {
    %c0_i32 = arith.constant 0 : i32
    %c0_i32_0 = arith.constant 0 : i32
    %c0_i32_1 = arith.constant 0 : i32
    %c0_i32_2 = arith.constant 0 : i32
    return %c0_i32, %c0_i32_0, %c0_i32_1 : i32, i32, i32
  }
  func.func @transform_2(%arg0: i32) -> (i32, i32) {
    %c0_i32 = arith.constant 0 : i32
    %c0_i32_0 = arith.constant 0 : i32
    %c0_i32_1 = arith.constant 0 : i32
    return %c0_i32, %c0_i32_0 : i32, i32
  }
  func.func @transform_3(%arg0: i32) -> (i32, i32) {
    %c0_i32 = arith.constant 0 : i32
    %c0_i32_0 = arith.constant 0 : i32
    %c0_i32_1 = arith.constant 0 : i32
    return %c0_i32, %c0_i32_0 : i32, i32
  }
  func.func @transform_4(%arg0: i32) -> (i32, i32) {
    %c0_i32 = arith.constant 0 : i32
    %c0_i32_0 = arith.constant 0 : i32
    %c0_i32_1 = arith.constant 0 : i32
    return %c0_i32, %c0_i32_0 : i32, i32
  }
}

</mosaic_0001>

<bundles_post_ra>
// kernel: tpu_custom_call.1
= control target key start
LH: loop header
LB: loop body
LE: loop exit
PB: predicated region body
PF: predicated region fallthrough
CT: control target
= control target key end

     0   :  { %9 = vsyncpa [#allocation3], 0  ;;  %s2391_s0 = inlined_call_operand.hbm [shape: f32[2,4,32], index: 0, kind: input, shape index: {}]   ;;  %s2392_s1 = inlined_call_operand.hbm [shape: f32[2,8,32], index: 1, kind: input, shape index: {}]   ;;  %s2393_s2 = inlined_call_operand.hbm [shape: f32[32,96], index: 2, kind: input, shape index: {}]   ;;  %s2394_s3 = inlined_call_operand.vmem [shape: f32[1,96], index: 3, kind: input, shape index: {}]   ;;  %s2395_s4 = inlined_call_operand.hbm [shape: f32[8,32], index: 4, kind: output, shape index: {}]  }
   0x1   :  { %10 = vsyncpa [#allocation6], 0 }
   0x2   :  { %11 = vsyncpa [#allocation4], 0  ;;  %s2108_s15 = smov [#allocation5]   ;;  %s2014_s19 = scalar_lea.hbm %s2392_s1, 256 }
   0x3   :  { %s29_s16 = sshll.u32 %s2108_s15, 4  ;;  %p2015_p0 = scmp.ne.s32.totalorder %s2392_s1, %s2014_s19  ;;  %s30_s16 = int_to_ptr.vmem [resolvable:$true] %s29_s16 }
   0x4   :  { %p2018_p1 = scmp.lt.u32.totalorder %s2014_s19, %s2392_s1 }
   0x6   :  { %p2020_p2 = pnand %p2018_p1, %p2015_p0 }
   0x8   :  { %2023 = shalt.err (!%p2020_p2)
}
   0x9   :  { %s2024_s24 = scalar_lea.vmem %s30_s16, 256  ;;  %p2029_p4 = scmp.lt.s32.totalorder %s30_s16, %s30_s16 }
   0xa   :  { %p2025_p3 = scmp.ne.s32.totalorder %s30_s16, %s2024_s24  ;;  %p2030_p5 = scmp.lt.s32.totalorder %s2024_s24, %s2024_s24 }
   0xc   :  { %p2031_p6 = por %p2030_p5, %p2029_p4 }
   0xe   :  { %p2032_p7 = pnand %p2031_p6, %p2025_p3 }
  0x10   :  { %2035 = shalt.err (!%p2032_p7)
}
  0x11   :  { %s2109_s25 = smov 128   ;;  %s2110_s26 = smov 8  }
  0x12   :  { %35 = dma.hbm_to_vmem [thread:$0]  %s2392_s1, 256, %s30_s16, [#allocation6], %s2109_s25, %s2109_s25, %s2110_s26  }
  0x13   :  { %s2111_s29 = smov [#allocation2]   ;;  %s2036_s7 = scalar_lea.hbm %s2391_s0, 128 }
  0x14   :  { %s17_s30 = sshll.u32 %s2111_s29, 4  ;;  %p2037_p8 = scmp.ne.s32.totalorder %s2391_s0, %s2036_s7  ;;  %s18_s30 = int_to_ptr.vmem [resolvable:$true] %s17_s30 }
  0x15   :  { %p2040_p9 = scmp.lt.u32.totalorder %s2036_s7, %s2391_s0 }
  0x17   :  { %p2042_p10 = pnand %p2040_p9, %p2037_p8 }
  0x19   :  { %2045 = shalt.err (!%p2042_p10)
}
  0x1a   :  { %s2046_s12 = scalar_lea.vmem %s18_s30, 128  ;;  %p2051_p12 = scmp.lt.s32.totalorder %s18_s30, %s18_s30 }
  0x1b   :  { %p2047_p11 = scmp.ne.s32.totalorder %s18_s30, %s2046_s12  ;;  %p2052_p13 = scmp.lt.s32.totalorder %s2046_s12, %s2046_s12 }
  0x1d   :  { %p2053_p0 = por %p2052_p13, %p2051_p12 }
  0x1f   :  { %p2054_p1 = pnand %p2053_p0, %p2047_p11 }
  0x21   :  { %2057 = shalt.err (!%p2054_p1)
}
  0x22   :  { %s2112_s1 = smov 64   ;;  %s2113_s13 = smov 4  }
  0x23   :  { %23 = dma.hbm_to_vmem [thread:$0]  %s2391_s0, 128, %s18_s30, [#allocation3], %s2112_s1, %s2112_s1, %s2113_s13  }
  0x24   :  { %s2114_s16 = smov [#allocation7]   ;;  %s2058_s20 = scalar_lea.hbm %s2393_s2, 512 }
  0x25   :  { %s41_s17 = sshll.u32 %s2114_s16, 4  ;;  %p2059_p2 = scmp.ne.s32.totalorder %s2393_s2, %s2058_s20  ;;  %s42_s17 = int_to_ptr.vmem [resolvable:$true] %s41_s17 }
  0x26   :  { %p2062_p3 = scmp.lt.u32.totalorder %s2058_s20, %s2393_s2 }
  0x28   :  { %p2064_p4 = pnand %p2062_p3, %p2059_p2 }
  0x2a   :  { %2067 = shalt.err (!%p2064_p4)
}
  0x2b   :  { %s2068_s27 = scalar_lea.vmem %s42_s17, 512  ;;  %p2073_p6 = scmp.lt.s32.totalorder %s42_s17, %s42_s17 }
  0x2c   :  { %p2069_p5 = scmp.ne.s32.totalorder %s42_s17, %s2068_s27  ;;  %p2074_p7 = scmp.lt.s32.totalorder %s2068_s27, %s2068_s27 }
  0x2e   :  { %p2075_p8 = por %p2074_p7, %p2073_p6 }
  0x30   :  { %p2076_p9 = pnand %p2075_p8, %p2069_p5 }
  0x32   :  { %2079 = shalt.err (!%p2076_p9)
}
  0x33   :  { %47 = dma.hbm_to_vmem [thread:$0]  %s2393_s2, 512, %s42_s17, [#allocation6], %s2109_s25, %s2109_s25, %s2110_s26  }
  0x34   :  { %2102 = dma.done.wait [#allocation3], 128  }
  0x35   :  { %2103 = vsyncadd [#allocation3], 4294967168 }
  0x36   :  { %2104 = dma.done.wait [#allocation6], 768  }
  0x37   :  { %2105 = vsyncadd [#allocation6], 4294966528  ;;  %v2115_v0 = vmov 0.0|0.0   ;;  %vm2116_vm0 = vmmov 0   ;;  %v2117_v1 = vmov 0.0   ;;  %v66_v2 = vld [vmem:[#allocation7] sm:$0xff] }
  0x38   :  { %1823 = vmatprep.subr.bf16.mxu0 %v2115_v0  ;;  %1702 = vmatprep.mubr.msk.f32.mxu0 %vm2116_vm0, %v2117_v1  ;;  %v67_v3 = vld [vmem:[#allocation7 + $0x8] sm:$0xff]  ;;  %v68_v4 = vld [vmem:[#allocation7 + $0x10] sm:$0xff]  ;;  %v69_v6 = vld [vmem:[#allocation7 + $0x18] sm:$0xff]  ;;  %vm77_vm1 = vcmask 261120   ;;  %vm169_vm2 = vcmask 1043456   ;;  %s2118_s29 = smov 72  }
  0x39   :  { %1829 = vmatprep.subr.bf16.mxu1 %v2115_v0  ;;  %1715 = vmatprep.mubr.msk.f32.mxu1 %vm2116_vm0, %v2117_v1  ;;  %v1824_v5 = vpack.c.bf16 %v67_v3, %v66_v2  ;;  %v1827_v7 = vpack.c.bf16 %v69_v6, %v68_v4  ;;  %v1997_v8 = vld [vmem:[#allocation2] sm:$0xff]   ;;  %v61_v9 = vld [vmem:[#allocation5] sm:$0xff]  ;;  %v62_v10 = vld [vmem:[#allocation5 + $0x8] sm:$0xff]  ;;  %s2119_s30 = smov 96   ;;  %s2121_s5 = smov 88   ;;  %vm176_vm3 = vcmask 64512  }
  0x3a   :  { %v1595_v13 = vld [vmem:[%s2394_s3] ss:$0 sm:$0xff]  ;;  %s2120_s3 = smov 120   ;;  %s2122_s6 = smov 80   ;;  %vm2243_vm4 = vmpackc.low %vm176_vm3, %vm176_vm3  ;;  %vm857_vm5 = vcmask 97280   ;;  %vm2128_vm6 = vmmov 1  }
  0x3b   :  { %1825 = vmatpush3.bf16.msra.mxu0 %v1824_v5  ;;  %s2123_s7 = smov 104   ;;  %s2124_s8 = smov 112   ;;  %vm2315_vm7 = vmpackc.low %vm169_vm2, %vm2128_vm6  ;;  %vm1237_vm8 = vcmask 195584   ;;  %vm1235_vm9 = vcmask 130048  }
  0x3c   :  { %1826 = vmatprep.subr.bf16.mxu0 %v2115_v0  ;;  %s2125_s9 = smov 48   ;;  %s2126_s10 = smov 40  }
  0x3d   :  { %s2127_s11 = smov 56   ;;  %s2129_s12 = smov 16  }
  0x3f   :  { %1828 = vmatpush3.bf16.msra.mxu0 %v1827_v7 }
  0x40   :  { %1837 = vmatprep.subr.bf16.mxu0 %v2115_v0 }
  0x42   :  { %1703 = vmatmul.mubr.msk.f32.vlgmr.msra.gmra.mrb[0].mxu0 %vm77_vm1, %v1997_v8 }
  0x43   :  { %1705 = vmatprep.mubr.msk.f32.mxu0 %vm2116_vm0, %v2117_v1 }
  0x46   :  { %1706 = vmatmul.mubr.msk.f32.gmra.mrb[2].mxu0 %vm77_vm1, %v61_v9 }
  0x47   :  { %1708 = vmatprep.mubr.msk.f32.mxu0 %vm2116_vm0, %v2117_v1 }
  0x4a   :  { %1709 = vmatmul.mubr.msk.f32.gmra.mrb[4].mxu0 %vm77_vm1, %v62_v10 }
  0x4b   :  { %1729 = vmatprep.mubr.msk.f32.mxu0 %vm2116_vm0, %v2117_v1 }
 0x115   :  { %v152_v11 = vpop.f32.mrb[0].mxu0 }
 0x116   :  { %v1704_v12 = vpop.f32.mrb[1].mxu0  ;;  %v153_v17 = vadd.f32 %v1595_v13, %v152_v11 }
 0x118   :  { %v504_v24 = vrot.slane %v153_v17, 4 }
 0x119   :  { %v157_v14 = vpop.f32.mrb[2].mxu0 }
 0x11a   :  { %v158_v15 = vadd.f32 %v1595_v13, %v157_v14  ;;  %v1707_v16 = vpop.f32.mrb[3].mxu0 }
 0x11c   :  { %v167_v18 = vrot.slane %v158_v15, 4 }
 0x11d   :  { %v162_v19 = vpop.f32.mrb[4].mxu0 }
 0x11e   :  { %v163_v20 = vadd.f32 %v1595_v13, %v162_v19  ;;  %v170_v21 = vsel %vm169_vm2, %v153_v17, %v167_v18  ;;  %v1710_v22 = vpop.f32.mrb[5].mxu0 }
 0x11f   :  { %v2222_v23 = vpack.i.bf16 %v167_v18, %v170_v21 }
 0x120   :  { %v507_v25 = vrot.slane %v163_v20, 4 }
 0x121   :  { %1928 = vrot.lane.b32.xlu1 %v2222_v23, %s2118_s29  ;;  %1918 = vrot.lane.b32.xlu0 %v2222_v23, %s2119_s30 }
 0x122   :  { %v2227_v26 = vsel %vm169_vm2, %v504_v24, %v507_v25 }
 0x123   :  { %v2231_v27 = vpack.i.bf16 %v507_v25, %v2227_v26 }
 0x125   :  { %254 = vrot.lane.b32.xlu1 %v170_v21, %s2120_s3  ;;  %1923 = vrot.lane.b32.xlu0 %v2222_v23, %s2121_s5 }
 0x129   :  { %1933 = vrot.lane.b32.xlu0 %v2222_v23, %s2122_s6  ;;  %1938 = vrot.lane.b32.xlu1 %v2231_v27, %s2121_s5 }
 0x12d   :  { %420 = vrot.lane.b32.xlu0 %v170_v21, %s2123_s7  ;;  %1943 = vrot.lane.b32.xlu1 %v2231_v27, %s2119_s30 }
 0x131   :  { %337 = vrot.lane.b32.xlu0 %v170_v21, %s2124_s8  ;;  %1948 = vrot.lane.b32.xlu1 %v2231_v27, %s2118_s29 }
 0x135   :  { %592 = vrot.lane.b32.xlu0 %v2227_v26, %s2120_s3  ;;  %1953 = vrot.lane.b32.xlu1 %v2231_v27, %s2122_s6 }
 0x139   :  { %758 = vrot.lane.b32.xlu0 %v2227_v26, %s2123_s7  ;;  %675 = vrot.lane.b32.xlu1 %v2227_v26, %s2124_s8 }
 0x193   :  { %v1929_v28 = vpop.permute.xlu1 %1928  ;;  %v1919_v29 = vpop.permute.xlu0 %1918 }
 0x194   :  { %v1921_v30 = vunpack.i.h.bf16 %v1919_v29  ;;  %v1920_v31 = vunpack.i.l.bf16 %v1919_v29  ;;  %v1931_v46 = vunpack.i.h.bf16 %v1929_v28  ;;  %v1930_v47 = vunpack.i.l.bf16 %v1929_v28 }
 0x196   :  { %v1830_v33 = vpack.c.bf16 %v1921_v30, %v1920_v31  ;;  %v1842_v51 = vpack.c.bf16 %v1931_v46, %v1930_v47 }
 0x197   :  { %v255_v34 = vpop.permute.xlu1 %254  ;;  %v1924_v35 = vpop.permute.xlu0 %1923 }
 0x198   :  { %1832 = vmatpush3.bf16.xpose.msk.msra.mxu1 %vm2243_vm4, %v1830_v33  ;;  %v1926_v36 = vunpack.i.h.bf16 %v1924_v35  ;;  %v1925_v37 = vunpack.i.l.bf16 %v1924_v35 }
 0x199   :  { %1833 = vmatprep.subr.bf16.mxu1 %v2115_v0 }
 0x19a   :  { %v1834_v42 = vpack.c.bf16 %v1926_v36, %v1925_v37 }
 0x19b   :  { %v1934_v38 = vpop.permute.xlu0 %1933  ;;  %v1939_v39 = vpop.permute.xlu1 %1938 }
 0x19c   :  { %v1936_v40 = vunpack.i.h.bf16 %v1934_v38  ;;  %v1935_v41 = vunpack.i.l.bf16 %v1934_v38  ;;  %v1941_v55 = vunpack.i.h.bf16 %v1939_v39  ;;  %v1940_v56 = vunpack.i.l.bf16 %v1939_v39 }
 0x19e   :  { %v1838_v43 = vpack.c.bf16 %v1936_v40, %v1935_v41  ;;  %v1850_v59 = vpack.c.bf16 %v1941_v55, %v1940_v56 }
 0x19f   :  { %1716 = vmatmul.mubr.msk.f32.vlgmr.msra.gmra.mrb[0].mxu1 %vm176_vm3, %v170_v21  ;;  %v1944_v44 = vpop.permute.xlu1 %1943  ;;  %v421_v45 = vpop.permute.xlu0 %420 }
 0x1a0   :  { %1836 = vmatpush3.bf16.xpose.msk.msra.mxu1 %vm2243_vm4, %v1834_v42  ;;  %1840 = vmatpush3.bf16.xpose.msk.msra.mxu0 %vm2243_vm4, %v1838_v43  ;;  %v1946_v48 = vunpack.i.h.bf16 %v1944_v44  ;;  %v1945_v49 = vunpack.i.l.bf16 %v1944_v44 }
 0x1a1   :  { %1722 = vmatprep.mubr.msk.f32.mxu1 %vm2116_vm0, %v2117_v1  ;;  %1841 = vmatprep.subr.bf16.mxu1 %v2115_v0 }
 0x1a2   :  { %1845 = vmatprep.subr.bf16.mxu0 %v2115_v0  ;;  %v1846_v52 = vpack.c.bf16 %v1946_v48, %v1945_v49 }
 0x1a3   :  { %v1949_v50 = vpop.permute.xlu1 %1948  ;;  %v338_v53 = vpop.permute.xlu0 %337 }
 0x1a4   :  { %v1951_v61 = vunpack.i.h.bf16 %v1949_v50  ;;  %v1950_v62 = vunpack.i.l.bf16 %v1949_v50 }
 0x1a6   :  { %v1858_v63 = vpack.c.bf16 %v1951_v61, %v1950_v62 }
 0x1a7   :  { %1723 = vmatmul.mubr.msk.f32.vlgmr.msra.gmra.mrb[2].mxu1 %vm176_vm3, %v255_v34  ;;  %1730 = vmatmul.mubr.msk.f32.vlgmr.msra.gmra.mrb[6].mxu0 %vm176_vm3, %v338_v53  ;;  %v1954_v54 = vpop.permute.xlu1 %1953  ;;  %v593_v2 = vpop.permute.xlu0 %592 }
 0x1a8   :  { %1844 = vmatpush3.bf16.xpose.msk.msra.mxu1 %vm2243_vm4, %v1842_v51  ;;  %1848 = vmatpush3.bf16.xpose.msk.msra.mxu0 %vm2243_vm4, %v1846_v52  ;;  %v1956_v57 = vunpack.i.h.bf16 %v1954_v54  ;;  %v1955_v58 = vunpack.i.l.bf16 %v1954_v54 }
 0x1a9   :  { %1736 = vmatprep.mubr.msk.f32.mxu1 %vm2116_vm0, %v2117_v1  ;;  %1743 = vmatprep.mubr.msk.f32.mxu0 %vm2116_vm0, %v2117_v1 }
 0x1aa   :  { %1849 = vmatprep.subr.bf16.mxu1 %v2115_v0  ;;  %1853 = vmatprep.subr.bf16.mxu0 %v2115_v0  ;;  %v1854_v60 = vpack.c.bf16 %v1956_v57, %v1955_v58 }
 0x1ab   :  { %v676_v3 = vpop.permute.xlu1 %675  ;;  %v759_v4 = vpop.permute.xlu0 %758 }
 0x1af   :  { %1737 = vmatmul.mubr.msk.f32.vlgmr.msra.gmra.mrb[4].mxu1 %vm176_vm3, %v421_v45  ;;  %1744 = vmatmul.mubr.msk.f32.vlgmr.msra.gmra.mrb[8].mxu0 %vm176_vm3, %v2227_v26 }
 0x1b0   :  { %1852 = vmatpush3.bf16.xpose.msk.msra.mxu1 %vm2243_vm4, %v1850_v59  ;;  %1856 = vmatpush3.bf16.xpose.msk.msra.mxu0 %vm2243_vm4, %v1854_v60 }
 0x1b1   :  { %1750 = vmatprep.mubr.msk.f32.mxu1 %vm2116_vm0, %v2117_v1  ;;  %1757 = vmatprep.mubr.msk.f32.mxu0 %vm2116_vm0, %v2117_v1 }
 0x1b2   :  { %1857 = vmatprep.subr.bf16.mxu1 %v2115_v0  ;;  %1861 = vmatprep.subr.bf16.mxu0 %v2115_v0 }
 0x1b7   :  { %1751 = vmatmul.mubr.msk.f32.vlgmr.msra.gmra.mrb[6].mxu1 %vm176_vm3, %v593_v2  ;;  %1758 = vmatmul.mubr.msk.f32.vlgmr.msra.gmra.mrb[10].mxu0 %vm176_vm3, %v676_v3 }
 0x1b8   :  { %1860 = vmatpush3.bf16.xpose.msk.msra.mxu1 %vm2243_vm4, %v1858_v63  ;;  %1764 = vmatprep.mubr.msk.f32.mxu1 %vm2116_vm0, %v2117_v1 }
 0x1b9   :  { %1869 = vmatprep.subr.bf16.mxu1 %v2115_v0  ;;  %1771 = vmatprep.mubr.msk.f32.mxu0 %vm2116_vm0, %v2117_v1 }
 0x1bf   :  { %1765 = vmatmul.mubr.msk.f32.vlgmr.msra.gmra.mrb[8].mxu1 %vm176_vm3, %v759_v4 }
 0x1c0   :  { %1785 = vmatprep.mubr.msk.f32.mxu1 %vm2116_vm0, %v2117_v1 }
 0x272   :  { %v249_v5 = vpop.f32.mrb[0].mxu1 }
 0x273   :  { %v1717_v6 = vpop.f32.mrb[1].mxu1  ;;  %v253_v12 = vmul.f32 0.17677669, %v249_v5 }
 0x27a   :  { %v332_v7 = vpop.f32.mrb[2].mxu1  ;;  %v415_v8 = vpop.f32.mrb[6].mxu0 }
 0x27b   :  { %v336_v9 = vmul.f32 0.17677669, %v332_v7  ;;  %v1724_v10 = vpop.f32.mrb[3].mxu1  ;;  %v1731_v11 = vpop.f32.mrb[7].mxu0  ;;  %v419_v21 = vmul.f32 0.17677669, %v415_v8 }
 0x27d   :  { %v842_v13 = vrot.slane %v336_v9, 4 }
 0x27f   :  { %v853_v14 = vsel %vm169_vm2, %v253_v12, %v842_v13 }
 0x280   :  { %v858_v15 = vsel %vm857_vm5, %v853_v14, -inf }
 0x281   :  { %859 = vmax.xlane.f32.xlu0 %v858_v15 }
 0x282   :  { %v498_v16 = vpop.f32.mrb[4].mxu1  ;;  %v587_v17 = vpop.f32.mrb[8].mxu0 }
 0x283   :  { %v502_v18 = vmul.f32 0.17677669, %v498_v16  ;;  %v1738_v19 = vpop.f32.mrb[5].mxu1  ;;  %v1745_v20 = vpop.f32.mrb[9].mxu0  ;;  %v591_v32 = vmul.f32 0.17677669, %v587_v17 }
 0x285   :  { %v845_v22 = vrot.slane %v502_v18, 4 }
 0x287   :  { %v854_v24 = vsel %vm169_vm2, %v419_v21, %v845_v22 }
 0x288   :  { %v861_v25 = vsel %vm857_vm5, %v854_v24, -inf }
 0x289   :  { %862 = vmax.xlane.f32.xlu1 %v861_v25 }
 0x28a   :  { %v670_v26 = vpop.f32.mrb[6].mxu1  ;;  %v753_v28 = vpop.f32.mrb[10].mxu0 }
 0x28b   :  { %v674_v29 = vmul.f32 0.17677669, %v670_v26  ;;  %v1752_v30 = vpop.f32.mrb[7].mxu1  ;;  %v1759_v31 = vpop.f32.mrb[11].mxu0  ;;  %v757_v39 = vmul.f32 0.17677669, %v753_v28 }
 0x28d   :  { %v848_v33 = vrot.slane %v674_v29, 4 }
 0x28f   :  { %v855_v34 = vsel %vm169_vm2, %v591_v32, %v848_v33 }
 0x290   :  { %v864_v35 = vsel %vm857_vm5, %v855_v34, -inf }
 0x291   :  { %865 = vmax.xlane.f32.xlu0 %v864_v35 }
 0x292   :  { %v836_v36 = vpop.f32.mrb[8].mxu1 }
 0x293   :  { %v840_v37 = vmul.f32 0.17677669, %v836_v36  ;;  %v1766_v38 = vpop.f32.mrb[9].mxu1 }
 0x295   :  { %v851_v40 = vrot.slane %v840_v37, 4 }
 0x297   :  { %v856_v41 = vsel %vm169_vm2, %v757_v39, %v851_v40 }
 0x298   :  { %v867_v42 = vsel %vm857_vm5, %v856_v41, -inf }
 0x299   :  { %868 = vmax.xlane.f32.xlu0 %v867_v42 }
 0x29a   :  { %1958 = vrot.lane.b32.xlu1 %v2222_v23, %s2112_s1 }
 0x29e   :  { %1968 = vrot.lane.b32.xlu1 %v2222_v23, %s2125_s9 }
 0x2a2   :  { %1973 = vrot.lane.b32.xlu1 %v2222_v23, %s2126_s10 }
 0x2a6   :  { %1983 = vrot.lane.b32.xlu1 %v2231_v27, %s2127_s11 }
 0x2af   :  { %1963 = vrot.lane.b32.xlu0 %v2222_v23, %s2127_s11 }
 0x2b3   :  { %1978 = vrot.lane.b32.xlu0 %v2231_v27, %s2112_s1  ;;  %s2130_s1 = smov 24  }
 0x30e   :  { %v860_v43 = vpop.xlane.xlu0 %859 }
 0x30f   :  { %v870_v44 = vsub.f32 %v853_v14, %v860_v43 }
 0x311   :  { %v874_v45 = vmul.f32 1.442695, %v870_v44 }
 0x313   :  { %1998 = vpow2.f32 %v874_v45 }
 0x316   :  { %v863_v46 = vpop.xlane.xlu1 %862 }
 0x317   :  { %v871_v47 = vsub.f32 %v854_v24, %v863_v46 }
 0x319   :  { %v876_v48 = vmul.f32 1.442695, %v871_v47 }
 0x31a   :  { %v1959_v49 = vpop.permute.xlu1 %1958 }
 0x31b   :  { %2000 = vpow2.f32 %v876_v48  ;;  %v1961_v50 = vunpack.i.h.bf16 %v1959_v49  ;;  %v1960_v51 = vunpack.i.l.bf16 %v1959_v49 }
 0x31d   :  { %v1999_v23 = vpop.eup %1998  ;;  %v1862_v53 = vpack.c.bf16 %v1961_v50, %v1960_v51 }
 0x31e   :  { %v1969_v54 = vpop.permute.xlu1 %1968  ;;  %v866_v55 = vpop.xlane.xlu0 %865  ;;  %v882_v56 = vsel %vm857_vm5, %v1999_v23, 0.0 }
 0x31f   :  { %v1971_v57 = vunpack.i.h.bf16 %v1969_v54  ;;  %v1970_v58 = vunpack.i.l.bf16 %v1969_v54  ;;  %v872_v59 = vsub.f32 %v855_v34, %v866_v55  ;;  %883 = vadd.xlane.f32.xlu1 %v882_v56  ;;  %1864 = vmatpush3.bf16.msk.msra.mxu0 %vm2315_vm7, %v1862_v53 }
 0x320   :  { %1865 = vmatprep.subr.bf16.mxu0 %v2115_v0 }
 0x321   :  { %v1870_v60 = vpack.c.bf16 %v1971_v57, %v1970_v58  ;;  %v878_v61 = vmul.f32 1.442695, %v872_v59 }
 0x322   :  { %v1974_v9 = vpop.permute.xlu1 %1973 }
 0x323   :  { %2002 = vpow2.f32 %v878_v61  ;;  %1872 = vmatpush3.bf16.msk.msra.mxu1 %vm2315_vm7, %v1870_v60  ;;  %v1976_v19 = vunpack.i.h.bf16 %v1974_v9  ;;  %v1975_v20 = vunpack.i.l.bf16 %v1974_v9 }
 0x324   :  { %1877 = vmatprep.subr.bf16.mxu1 %v2115_v0 }
 0x325   :  { %v2001_v62 = vpop.eup %2000  ;;  %v1874_v24 = vpack.c.bf16 %v1976_v19, %v1975_v20 }
 0x326   :  { %v869_v63 = vpop.xlane.xlu0 %868  ;;  %v885_v2 = vsel %vm857_vm5, %v2001_v62, 0.0  ;;  %v1984_v10 = vpop.permute.xlu1 %1983 }
 0x327   :  { %v873_v3 = vsub.f32 %v856_v41, %v869_v63  ;;  %886 = vadd.xlane.f32.xlu0 %v885_v2  ;;  %v1986_v29 = vunpack.i.h.bf16 %v1984_v10  ;;  %v1985_v30 = vunpack.i.l.bf16 %v1984_v10 }
 0x329   :  { %v880_v4 = vmul.f32 1.442695, %v873_v3  ;;  %v1882_v34 = vpack.c.bf16 %v1986_v29, %v1985_v30 }
 0x32a   :  { %v1964_v11 = vpop.permute.xlu0 %1963 }
 0x32b   :  { %2004 = vpow2.f32 %v880_v4  ;;  %v1966_v15 = vunpack.i.h.bf16 %v1964_v11  ;;  %v1965_v16 = vunpack.i.l.bf16 %v1964_v11 }
 0x32d   :  { %v2003_v5 = vpop.eup %2002  ;;  %v1866_v21 = vpack.c.bf16 %v1966_v15, %v1965_v16 }
 0x32e   :  { %v888_v6 = vsel %vm857_vm5, %v2003_v5, 0.0  ;;  %v1979_v13 = vpop.permute.xlu0 %1978 }
 0x32f   :  { %889 = vadd.xlane.f32.xlu1 %v888_v6  ;;  %v1981_v25 = vunpack.i.h.bf16 %v1979_v13  ;;  %v1980_v26 = vunpack.i.l.bf16 %v1979_v13 }
 0x331   :  { %v1878_v32 = vpack.c.bf16 %v1981_v25, %v1980_v26 }
 0x335   :  { %v2328_v7 = vpop.eup %2004 }
 0x336   :  { %v891_v8 = vsel %vm857_vm5, %v2328_v7, 0.0 }
 0x337   :  { %892 = vadd.xlane.f32.xlu0 %v891_v8 }
 0x340   :  { %1993 = vrot.lane.b32.xlu1 %v2231_v27, %s2126_s10 }
 0x34d   :  { %1988 = vrot.lane.b32.xlu0 %v2231_v27, %s2125_s9 }
 0x3ac   :  { %v884_v12 = vpop.xlane.xlu1 %883 }
 0x3ad   :  { %2006 = vrcp.f32 %v884_v12 }
 0x3b4   :  { %v887_v14 = vpop.xlane.xlu0 %886 }
 0x3b5   :  { %2008 = vrcp.f32 %v887_v14 }
 0x3b7   :  { %v2007_v17 = vpop.eup %2006 }
 0x3b8   :  { %v898_v18 = vmul.f32 %v2007_v17, %v1999_v23 }
 0x3ba   :  { %1772 = vmatmul.mubr.msk.f32.vlgmr.msra.gmra.mrb[12].mxu0 %vm857_vm5, %v898_v18  ;;  %v982_v22 = vrot.slane %v898_v18, 4 }
 0x3bb   :  { %1868 = vmatpush3.bf16.msk.msra.mxu0 %vm2315_vm7, %v1866_v21  ;;  %1778 = vmatprep.mubr.msk.f32.mxu0 %vm2116_vm0, %v2117_v1 }
 0x3bc   :  { %v890_v27 = vpop.xlane.xlu1 %889  ;;  %1873 = vmatprep.subr.bf16.mxu0 %v2115_v0 }
 0x3bd   :  { %2010 = vrcp.f32 %v890_v27 }
 0x3be   :  { %1779 = vmatmul.mubr.msk.f32.vlgmr.msra.gmra.mrb[14].mxu0 %vm857_vm5, %v982_v22 }
 0x3bf   :  { %v2009_v28 = vpop.eup %2008  ;;  %1876 = vmatpush3.bf16.msk.msra.mxu0 %vm2315_vm7, %v1874_v24  ;;  %1792 = vmatprep.mubr.msk.f32.mxu0 %vm2116_vm0, %v2117_v1 }
 0x3c0   :  { %v899_v31 = vmul.f32 %v2009_v28, %v2001_v62  ;;  %1881 = vmatprep.subr.bf16.mxu0 %v2115_v0  ;;  %v1994_v35 = vpop.permute.xlu1 %1993 }
 0x3c1   :  { %v1996_v38 = vunpack.i.h.bf16 %v1994_v35  ;;  %v1995_v39 = vunpack.i.l.bf16 %v1994_v35 }
 0x3c2   :  { %1786 = vmatmul.mubr.msk.f32.vlgmr.msra.gmra.mrb[10].mxu1 %vm857_vm5, %v899_v31  ;;  %v1142_v33 = vrot.slane %v899_v31, 4 }
 0x3c3   :  { %1880 = vmatpush3.bf16.msk.msra.mxu1 %vm2315_vm7, %v1878_v32  ;;  %1799 = vmatprep.mubr.msk.f32.mxu1 %vm2116_vm0, %v2117_v1  ;;  %v1890_v45 = vpack.c.bf16 %v1996_v38, %v1995_v39 }
 0x3c4   :  { %v893_v36 = vpop.xlane.xlu0 %892  ;;  %1793 = vmatmul.mubr.msk.f32.vlgmr.msra.gmra.mrb[16].mxu0 %vm857_vm5, %v1142_v33  ;;  %1885 = vmatprep.subr.bf16.mxu1 %v2115_v0 }
 0x3c5   :  { %2012 = vrcp.f32 %v893_v36  ;;  %1884 = vmatpush3.bf16.msk.msra.mxu0 %vm2315_vm7, %v1882_v34  ;;  %1806 = vmatprep.mubr.msk.f32.mxu0 %vm2116_vm0, %v2117_v1 }
 0x3c6   :  { %1889 = vmatprep.subr.bf16.mxu0 %v2115_v0 }
 0x3c7   :  { %v2011_v37 = vpop.eup %2010 }
 0x3c8   :  { %v900_v40 = vmul.f32 %v2011_v37, %v2003_v5  ;;  %v1989_v41 = vpop.permute.xlu0 %1988 }
 0x3c9   :  { %v1991_v42 = vunpack.i.h.bf16 %v1989_v41  ;;  %v1990_v43 = vunpack.i.l.bf16 %v1989_v41 }
 0x3ca   :  { %1800 = vmatmul.mubr.msk.f32.vlgmr.msra.gmra.mrb[12].mxu1 %vm857_vm5, %v900_v40  ;;  %v1319_v44 = vrot.slane %v900_v40, 4 }
 0x3cb   :  { %v1886_v46 = vpack.c.bf16 %v1991_v42, %v1990_v43  ;;  %1813 = vmatprep.mubr.msk.f32.mxu1 %vm2116_vm0, %v2117_v1 }
 0x3cc   :  { %1807 = vmatmul.mubr.msk.f32.vlgmr.msra.gmra.mrb[18].mxu0 %vm857_vm5, %v1319_v44 }
 0x3cd   :  { %1892 = vmatpush3.bf16.msk.msra.mxu0 %vm2315_vm7, %v1890_v45  ;;  %1888 = vmatpush3.bf16.msk.msra.mxu1 %vm2315_vm7, %v1886_v46 }
 0x3ce   :  { %1820 = vmatprep.mubr.msk.f32.mxu0 %vm2116_vm0, %v2117_v1 }
 0x3cf   :  { %v2013_v0 = vpop.eup %2012 }
 0x3d0   :  { %v901_v47 = vmul.f32 %v2013_v0, %v2328_v7 }
 0x3d2   :  { %1814 = vmatmul.mubr.msk.f32.vlgmr.msra.gmra.mrb[14].mxu1 %vm857_vm5, %v901_v47  ;;  %v1479_v48 = vrot.slane %v901_v47, 4 }
 0x3d4   :  { %1821 = vmatmul.mubr.msk.f32.vlgmr.msra.gmra.mrb[20].mxu0 %vm857_vm5, %v1479_v48 }
 0x48d   :  { %v978_v49 = vpop.f32.mrb[12].mxu0 }
 0x48e   :  { %v1773_v50 = vpop.f32.mrb[13].mxu0 }
 0x491   :  { %v1058_v51 = vpop.f32.mrb[14].mxu0 }
 0x492   :  { %1223 = vrot.lane.b32.xlu0 %v1058_v51, %s2110_s26  ;;  %v1780_v23 = vpop.f32.mrb[15].mxu0 }
 0x495   :  { %v1138_v53 = vpop.f32.mrb[10].mxu1 }
 0x496   :  { %v1787_v52 = vpop.f32.mrb[11].mxu1 }
 0x497   :  { %v1218_v54 = vpop.f32.mrb[16].mxu0 }
 0x498   :  { %v1794_v55 = vpop.f32.mrb[17].mxu0 }
 0x49d   :  { %v1315_v56 = vpop.f32.mrb[12].mxu1 }
 0x49e   :  { %v1801_v1 = vpop.f32.mrb[13].mxu1 }
 0x49f   :  { %v1395_v57 = vpop.f32.mrb[18].mxu0 }
 0x4a0   :  { %1560 = vrot.lane.b32.xlu0 %v1395_v57, %s2110_s26  ;;  %v1808_v58 = vpop.f32.mrb[19].mxu0  ;;  %s2131_s26 = smov [#allocation8]  }
 0x4a1   :  { %s1585_s13 = sshll.u32 %s2131_s26, 4  ;;  %s1586_s13 = int_to_ptr.vmem [resolvable:$true] %s1585_s13 }
 0x4a2   :  { %s2080_s14 = scalar_lea.vmem %s1586_s13, 128  ;;  %p2085_p11 = scmp.lt.s32.totalorder %s1586_s13, %s1586_s13 }
 0x4a3   :  { %p2081_p10 = scmp.ne.s32.totalorder %s1586_s13, %s2080_s14  ;;  %p2086_p12 = scmp.lt.s32.totalorder %s2080_s14, %s2080_s14 }
 0x4a4   :  { %1227 = vrot.lane.b32.xlu0 %v1138_v53, %s2129_s12 }
 0x4a5   :  { %v1475_v59 = vpop.f32.mrb[14].mxu1  ;;  %p2087_p13 = por %p2086_p12, %p2085_p11 }
 0x4a6   :  { %1564 = vrot.lane.b32.xlu1 %v1475_v59, %s2129_s12  ;;  %v1815_v60 = vpop.f32.mrb[15].mxu1 }
 0x4a7   :  { %v1555_v61 = vpop.f32.mrb[20].mxu0  ;;  %p2088_p0 = pnand %p2087_p13, %p2081_p10 }
 0x4a8   :  { %v1822_v62 = vpop.f32.mrb[21].mxu0 }
 0x4aa   :  { %1568 = vrot.lane.b32.xlu1 %v1555_v61, %s2130_s1 }
 0x4ae   :  { %1231 = vrot.lane.b32.xlu1 %v1218_v54, %s2130_s1 }
 0x504   :  { %v1224_v63 = vpop.permute.xlu0 %1223 }
 0x505   :  { %v1234_v9 = vsel %vm176_vm3, %v978_v49, %v1224_v63 }
 0x512   :  { %v1561_v2 = vpop.permute.xlu0 %1560 }
 0x513   :  { %v1571_v4 = vsel %vm176_vm3, %v1315_v56, %v1561_v2 }
 0x516   :  { %v1228_v7 = vpop.permute.xlu0 %1227 }
 0x517   :  { %v1236_v10 = vsel %vm1235_vm9, %v1234_v9, %v1228_v7 }
 0x518   :  { %v1565_v3 = vpop.permute.xlu1 %1564 }
 0x519   :  { %v1572_v5 = vsel %vm1235_vm9, %v1571_v4, %v1565_v3 }
 0x51c   :  { %v1569_v6 = vpop.permute.xlu1 %1568 }
 0x51d   :  { %v1573_v8 = vsel %vm1237_vm8, %v1572_v5, %v1569_v6 }
 0x51e   :  { %v1575_v11 = vrot.slane %v1573_v8, 4 }
 0x520   :  { %v1232_v12 = vpop.permute.xlu1 %1231 }
 0x521   :  { %v1238_v13 = vsel %vm1237_vm8, %v1236_v10, %v1232_v12 }
 0x522   :  { %v1577_v14 = vsel %vm169_vm2, %v1238_v13, %v1575_v11 }
 0x523   :  { %1578 = vst.msk [vmem:[#allocation8] sm:$0xff] %vm77_vm1, %v1577_v14 }
 0x524   :  { %2091 = shalt.err (!%p2088_p0)
}
 0x525   :  { %s2092_s17 = scalar_lea.hbm %s2395_s4, 128 }
 0x526   :  { %p2093_p1 = scmp.ne.s32.totalorder %s2395_s4, %s2092_s17  ;;  %p2096_p2 = scmp.lt.u32.totalorder %s2092_s17, %s2395_s4 }
 0x528   :  { %p2098_p3 = pnand %p2096_p2, %p2093_p1 }
 0x52a   :  { %2101 = shalt.err (!%p2098_p3)
}
 0x52b   :  { %1588 = dma.vmem_to_hbm [thread:$0]  %s1586_s13, 128, %s2395_s4, [#allocation4]  }
 0x52c   :  { %2106 = dma.done.wait [#allocation4], 128  }
 0x52d   :  { %2107 = vsyncadd [#allocation4], 4294967168 }
 0x52e   :  { %1592 = vsyncpa [#allocation3], 1 }
 0x52f   :  { %1593 = vsyncpa [#allocation6], 1 }
 0x530   :  { %1594 = vsyncpa [#allocation4], 1 }

</bundles_post_ra>
